<compile_context>
chip_gen: v7x
topology: tpu7x:2x2x1
jax: 0.10.0
libtpu: 0.0.40
codegen_flags: <defaults>
</compile_context>

<pallas_src>
import jax
import jax.numpy as jnp
from jax.experimental import pallas as pl
from jax.experimental.pallas import tpu as pltpu


H1 = 128          # first hidden width (already lane-aligned)
H2_PAD = 128      # second hidden width padded 64 -> 128


def _leaky_relu(h, slope=0.2):
    return jnp.where(h > 0, h, slope * h)


def mlp_kernel(x_ref, w1_ref, b1_ref, w2_ref, b2_ref, w3_ref, b3_ref, o_ref):
    # x_ref: (TILE_B, DIM_P)  w1: (DIM_P, 128)  w2: (128, 128)  w3: (128, 1)
    x = x_ref[...]

    h = jnp.dot(x, w1_ref[...], preferred_element_type=jnp.float32) + b1_ref[...]
    h = _leaky_relu(h)

    h = jnp.dot(h, w2_ref[...], preferred_element_type=jnp.float32) + b2_ref[...]
    h = _leaky_relu(h)

    o = jnp.dot(h, w3_ref[...], preferred_element_type=jnp.float32) + b3_ref[0, 0]
    o_ref[...] = jax.nn.sigmoid(o).astype(o_ref.dtype)


def class_linear_forward(x, params, tile_b=1024):
    """x: (B, dim) float32.  params: dict of W1,b1,W2,b2,W3,b3 (unpadded)."""
    B, dim = x.shape
    dim_p = ((dim + 127) // 128) * 128          # 500 -> 512

    w1, b1 = params["W1"], params["b1"]          # (dim,128), (1,128)
    w2, b2 = params["W2"], params["b2"]          # (128,64),  (1,64)
    w3, b3 = params["W3"], params["b3"]          # (64,1),    (1,1)

    f32 = jnp.float32
    # Zero-pad parameters (exactly preserves the math).
    w1p = jnp.zeros((dim_p, H1), f32).at[:dim, :].set(w1.astype(f32))
    w2p = jnp.zeros((H1, H2_PAD), f32).at[:, : w2.shape[1]].set(w2.astype(f32))
    b2p = jnp.zeros((1, H2_PAD), f32).at[:, : b2.shape[1]].set(b2.astype(f32))
    w3p = jnp.zeros((H2_PAD, 1), f32).at[: w3.shape[0], :].set(w3.astype(f32))
    b1p = b1.astype(f32)
    b3p = b3.astype(f32)

    # Batch tile: multiple of 8 sublanes, capped at tile_b (~2 MiB x-tile).
    tb = min(tile_b, ((B + 7) // 8) * 8)
    tb = max(8, (tb // 8) * 8)
    b_pad = pl.cdiv(B, tb) * tb

    xp = x.astype(f32)
    if b_pad != B or dim_p != dim:
        xp = jnp.zeros((b_pad, dim_p), f32).at[:B, :dim].set(xp)

    grid = (b_pad // tb,)

    out = pl.pallas_call(
        mlp_kernel,
        out_shape=jax.ShapeDtypeStruct((b_pad, 1), f32),
        grid=grid,
        in_specs=[
            pl.BlockSpec((tb, dim_p), lambda i: (i, 0)),          # x (streamed)
            pl.BlockSpec((dim_p, H1), lambda i: (0, 0)),          # W1 (resident)
            pl.BlockSpec((1, H1), lambda i: (0, 0)),              # b1
            pl.BlockSpec((H1, H2_PAD), lambda i: (0, 0)),         # W2
            pl.BlockSpec((1, H2_PAD), lambda i: (0, 0)),          # b2
            pl.BlockSpec((H2_PAD, 1), lambda i: (0, 0)),          # W3
            pl.BlockSpec(memory_space=pltpu.MemorySpace.SMEM),    # b3 scalar
        ],
        out_specs=pl.BlockSpec((tb, 1), lambda i: (i, 0)),
        compiler_params=pltpu.CompilerParams(
            dimension_semantics=("parallel",)),
    )(xp, w1p, b1p, w2p, b2p, w3p, b3p)

    return out[:B]


def init_params(key, dim=500):
    """Deterministic init mimicking nn.Linear's uniform(-1/sqrt(fan_in), ...)."""
    def linear(k, fan_in, fan_out):
        kw, kb = jax.random.split(k)
        bound = 1.0 / jnp.sqrt(fan_in)
        W = jax.random.uniform(kw, (fan_in, fan_out), jnp.float32, -bound, bound)
        b = jax.random.uniform(kb, (1, fan_out), jnp.float32, -bound, bound)
        return W, b

    k1, k2, k3 = jax.random.split(key, 3)
    W1, b1 = linear(k1, dim, 128)
    W2, b2 = linear(k2, 128, 64)
    W3, b3 = linear(k3, 64, 1)
    return {"W1": W1, "b1": b1, "W2": W2, "b2": b2, "W3": W3, "b3": b3}


def reference_forward(x, p):
    h = x @ p["W1"] + p["b1"]
    h = jnp.where(h > 0, h, 0.2 * h)
    h = h @ p["W2"] + p["b2"]
    h = jnp.where(h > 0, h, 0.2 * h)
    o = h @ p["W3"] + p["b3"]
    return jax.nn.sigmoid(o)


if __name__ == "__main__":
    dim = 500

    key = jax.random.PRNGKey(0)
    kx, kp, kx2 = jax.random.split(key, 3)
    params = init_params(kp, dim=dim)

    # Small primary check (single tile).
    batch = 8
    x = jax.random.normal(kx, (batch, dim), jnp.float32)
    out = jax.block_until_ready(class_linear_forward(x, params))
    ref = reference_forward(x, params)
    assert out.shape == (batch, 1), out.shape
    assert jnp.allclose(out, ref, atol=1e-5, rtol=1e-5), (
        float(jnp.max(jnp.abs(out - ref)))
    )

    # Secondary check exercising the batch grid + ragged-tail padding.
    batch2 = 300
    x2 = jax.random.normal(kx2, (batch2, dim), jnp.float32)
    out2 = jax.block_until_ready(class_linear_forward(x2, params, tile_b=128))
    ref2 = reference_forward(x2, params)
    assert out2.shape == (batch2, 1), out2.shape
    assert jnp.allclose(out2, ref2, atol=1e-5, rtol=1e-5), (
        float(jnp.max(jnp.abs(out2 - ref2)))
    )

    print("KERNEL_OK")
</pallas_src>

<mosaic_0001>
module attributes {stable_mosaic.version = 11 : i64} {
  func.func @mlp_kernel(%arg0: i32, %arg1: memref<8x512xf32, #tpu.memory_space<vmem>>, %arg2: memref<512x128xf32, #tpu.memory_space<vmem>>, %arg3: memref<1x128xf32, #tpu.memory_space<vmem>>, %arg4: memref<128x128xf32, #tpu.memory_space<vmem>>, %arg5: memref<1x128xf32, #tpu.memory_space<vmem>>, %arg6: memref<128x1xf32, #tpu.memory_space<vmem>>, %arg7: memref<1x1xf32, #tpu.memory_space<smem>>, %arg8: memref<8x1xf32, #tpu.memory_space<vmem>>) attributes {dimension_semantics = [#tpu.dimension_semantics<parallel>], iteration_bounds = array<i64: 1>, scalar_prefetch = 0 : i64, scratch_operands = 0 : i64, tpu.core_type = #tpu.core_type<tc>, window_params = [{transform_indices = @transform_0, window_bounds = array<i64: 8, 512>}, {pipeline_mode = #tpu.pipeline_mode<synchronous>, transform_indices = @transform_1, window_bounds = array<i64: 512, 128>}, {pipeline_mode = #tpu.pipeline_mode<synchronous>, transform_indices = @transform_2, window_bounds = array<i64: 1, 128>}, {pipeline_mode = #tpu.pipeline_mode<synchronous>, transform_indices = @transform_3, window_bounds = array<i64: 128, 128>}, {pipeline_mode = #tpu.pipeline_mode<synchronous>, transform_indices = @transform_4, window_bounds = array<i64: 1, 128>}, {pipeline_mode = #tpu.pipeline_mode<synchronous>, transform_indices = @transform_5, window_bounds = array<i64: 128, 1>}, {transform_indices = @transform_6, window_bounds = array<i64: 1, 1>}, {transform_indices = @transform_7, window_bounds = array<i64: 8, 1>}]} {
    %c0 = arith.constant 0 : index
    %c0_0 = arith.constant 0 : index
    %0 = vector.load %arg1[%c0, %c0_0] : memref<8x512xf32, #tpu.memory_space<vmem>>, vector<8x512xf32>
    %c0_1 = arith.constant 0 : index
    %c0_2 = arith.constant 0 : index
    %1 = vector.load %arg2[%c0_1, %c0_2] : memref<512x128xf32, #tpu.memory_space<vmem>>, vector<512x128xf32>
    %cst = arith.constant dense<0.000000e+00> : vector<8x128xf32>
    %2 = tpu.matmul %0, %1, %cst {dimension_numbers = #tpu.dot_dimension_numbers<[1], [0], [0], [1], [0, 0, 1, 1], [], []>} : vector<8x512xf32>, vector<512x128xf32>, vector<8x128xf32> -> vector<8x128xf32>
    %c0_3 = arith.constant 0 : index
    %c0_4 = arith.constant 0 : index
    %3 = vector.load %arg3[%c0_3, %c0_4] : memref<1x128xf32, #tpu.memory_space<vmem>>, vector<1x128xf32>
    %4 = vector.broadcast %3 : vector<1x128xf32> to vector<8x128xf32>
    %5 = arith.addf %2, %4 : vector<8x128xf32>
    %cst_5 = arith.constant 0.000000e+00 : f32
    %6 = vector.broadcast %cst_5 : f32 to vector<8x128xf32>
    %7 = arith.cmpf ogt, %5, %6 : vector<8x128xf32>
    %cst_6 = arith.constant 2.000000e-01 : f32
    %8 = vector.broadcast %cst_6 : f32 to vector<8x128xf32>
    %9 = arith.mulf %8, %5 : vector<8x128xf32>
    %10 = arith.select %7, %5, %9 : vector<8x128xi1>, vector<8x128xf32>
    %c0_7 = arith.constant 0 : index
    %c0_8 = arith.constant 0 : index
    %11 = vector.load %arg4[%c0_7, %c0_8] : memref<128x128xf32, #tpu.memory_space<vmem>>, vector<128x128xf32>
    %cst_9 = arith.constant dense<0.000000e+00> : vector<8x128xf32>
    %12 = tpu.matmul %10, %11, %cst_9 {dimension_numbers = #tpu.dot_dimension_numbers<[1], [0], [0], [1], [0, 0, 1, 1], [], []>} : vector<8x128xf32>, vector<128x128xf32>, vector<8x128xf32> -> vector<8x128xf32>
    %c0_10 = arith.constant 0 : index
    %c0_11 = arith.constant 0 : index
    %13 = vector.load %arg5[%c0_10, %c0_11] : memref<1x128xf32, #tpu.memory_space<vmem>>, vector<1x128xf32>
    %14 = vector.broadcast %13 : vector<1x128xf32> to vector<8x128xf32>
    %15 = arith.addf %12, %14 : vector<8x128xf32>
    %cst_12 = arith.constant 0.000000e+00 : f32
    %16 = vector.broadcast %cst_12 : f32 to vector<8x128xf32>
    %17 = arith.cmpf ogt, %15, %16 : vector<8x128xf32>
    %cst_13 = arith.constant 2.000000e-01 : f32
    %18 = vector.broadcast %cst_13 : f32 to vector<8x128xf32>
    %19 = arith.mulf %18, %15 : vector<8x128xf32>
    %20 = arith.select %17, %15, %19 : vector<8x128xi1>, vector<8x128xf32>
    %c0_14 = arith.constant 0 : index
    %c0_15 = arith.constant 0 : index
    %21 = vector.load %arg6[%c0_14, %c0_15] : memref<128x1xf32, #tpu.memory_space<vmem>>, vector<128x1xf32>
    %cst_16 = arith.constant dense<0.000000e+00> : vector<8x1xf32>
    %22 = tpu.matmul %20, %21, %cst_16 {dimension_numbers = #tpu.dot_dimension_numbers<[1], [0], [0], [1], [0, 0, 1, 1], [], []>} : vector<8x128xf32>, vector<128x1xf32>, vector<8x1xf32> -> vector<8x1xf32>
    %c0_17 = arith.constant 0 : index
    %c0_18 = arith.constant 0 : index
    %23 = memref.load %arg7[%c0_17, %c0_18] : memref<1x1xf32, #tpu.memory_space<smem>>
    %24 = vector.broadcast %23 : f32 to vector<8x1xf32>
    %25 = arith.addf %22, %24 : vector<8x1xf32>
    %26 = arith.negf %25 : vector<8x1xf32>
    %27 = math.exp %26 : vector<8x1xf32>
    %cst_19 = arith.constant 1.000000e+00 : f32
    %28 = vector.broadcast %cst_19 : f32 to vector<8x1xf32>
    %29 = arith.addf %28, %27 : vector<8x1xf32>
    %30 = arith.divf %28, %29 : vector<8x1xf32>
    %c0_20 = arith.constant 0 : index
    %c0_21 = arith.constant 0 : index
    %31 = vector.load %arg8[%c0_20, %c0_21] : memref<8x1xf32, #tpu.memory_space<vmem>>, vector<8x1xf32>
    tpu.vector_store %arg8[%c0_20, %c0_21], %30 {strides = array<i32>} : memref<8x1xf32, #tpu.memory_space<vmem>>, vector<8x1xf32>,
    return
  }
  func.func @transform_0(%arg0: i32) -> (i32, i32) {
    %c0_i32 = arith.constant 0 : i32
    %c0_i32_0 = arith.constant 0 : i32
    return %arg0, %c0_i32 : i32, i32
  }
  func.func @transform_1(%arg0: i32) -> (i32, i32) {
    %c0_i32 = arith.constant 0 : i32
    %c0_i32_0 = arith.constant 0 : i32
    %c0_i32_1 = arith.constant 0 : i32
    return %c0_i32, %c0_i32_0 : i32, i32
  }
  func.func @transform_2(%arg0: i32) -> (i32, i32) {
    %c0_i32 = arith.constant 0 : i32
    %c0_i32_0 = arith.constant 0 : i32
    %c0_i32_1 = arith.constant 0 : i32
    return %c0_i32, %c0_i32_0 : i32, i32
  }
  func.func @transform_3(%arg0: i32) -> (i32, i32) {
    %c0_i32 = arith.constant 0 : i32
    %c0_i32_0 = arith.constant 0 : i32
    %c0_i32_1 = arith.constant 0 : i32
    return %c0_i32, %c0_i32_0 : i32, i32
  }
  func.func @transform_4(%arg0: i32) -> (i32, i32) {
    %c0_i32 = arith.constant 0 : i32
    %c0_i32_0 = arith.constant 0 : i32
    %c0_i32_1 = arith.constant 0 : i32
    return %c0_i32, %c0_i32_0 : i32, i32
  }
  func.func @transform_5(%arg0: i32) -> (i32, i32) {
    %c0_i32 = arith.constant 0 : i32
    %c0_i32_0 = arith.constant 0 : i32
    %c0_i32_1 = arith.constant 0 : i32
    return %c0_i32, %c0_i32_0 : i32, i32
  }
  func.func @transform_6(%arg0: i32) -> (i32, i32) {
    %c0_i32 = arith.constant 0 : i32
    %c0_i32_0 = arith.constant 0 : i32
    %c0_i32_1 = arith.constant 0 : i32
    return %c0_i32, %c0_i32_0 : i32, i32
  }
  func.func @transform_7(%arg0: i32) -> (i32, i32) {
    %c0_i32 = arith.constant 0 : i32
    %c0_i32_0 = arith.constant 0 : i32
    return %arg0, %c0_i32 : i32, i32
  }
}

</mosaic_0001>

<bundles_post_ra>
// kernel: tpu_custom_call.1
= control target key start
LH: loop header
LB: loop body
LE: loop exit
PB: predicated region body
PF: predicated region fallthrough
CT: control target
= control target key end

     0   :  { %13 = vsyncpa [#allocation4], 0  ;;  %s1019_s0 = inlined_call_operand.hbm [shape: f32[8,512], index: 0, kind: input, shape index: {}]   ;;  %s1020_s1 = inlined_call_operand.hbm [shape: f32[512,128], index: 1, kind: input, shape index: {}]   ;;  %s1021_s2 = inlined_call_operand.vmem [shape: f32[1,128], index: 2, kind: input, shape index: {}]   ;;  %s1022_s3 = inlined_call_operand.vmem [shape: f32[128,128], index: 3, kind: input, shape index: {}]   ;;  %s1023_s4 = inlined_call_operand.vmem [shape: f32[1,128], index: 4, kind: input, shape index: {}]   ;;  %s1024_s5 = inlined_call_operand.vmem [shape: f32[128,1], index: 5, kind: input, shape index: {}]   ;;  %s1025_s6 = inlined_call_operand.<no memory space> [shape: f32[1,1], index: 6, kind: input, shape index: {}]   ;;  %s1026_s7 = inlined_call_operand.vmem [shape: f32[8,1], index: 7, kind: output, shape index: {}]  }
   0x1   :  { %14 = vsyncpa [#allocation6], 0  ;;  %s817_s24 = smov [#allocation3]   ;;  %s818_s26 = smov [#allocation5]  }
   0x2   :  { %s21_s25 = sshll.u32 %s817_s24, 4  ;;  %s30_s27 = sshll.u32 %s818_s26, 4  ;;  %s22_s25 = int_to_ptr.vmem [resolvable:$true] %s21_s25  ;;  %s864_s27 = int_to_ptr.vmem [resolvable:$true] %s30_s27 }
   0x3   :  { %s769_s30 = scalar_lea.hbm %s1019_s0, 512 }
   0x4   :  { %p770_p0 = scmp.ne.s32.totalorder %s1019_s0, %s769_s30  ;;  %p773_p1 = scmp.lt.u32.totalorder %s769_s30, %s1019_s0 }
   0x6   :  { %p775_p2 = pnand %p773_p1, %p770_p0 }
   0x8   :  { %778 = shalt.err (!%p775_p2)
}
   0x9   :  { %s779_s12 = scalar_lea.vmem %s22_s25, 512  ;;  %p784_p4 = scmp.lt.s32.totalorder %s22_s25, %s22_s25 }
   0xa   :  { %p780_p3 = scmp.ne.s32.totalorder %s22_s25, %s779_s12  ;;  %p785_p5 = scmp.lt.s32.totalorder %s779_s12, %s779_s12 }
   0xc   :  { %p786_p6 = por %p785_p5, %p784_p4 }
   0xe   :  { %p787_p7 = pnand %p786_p6, %p780_p3 }
  0x10   :  { %790 = shalt.err (!%p787_p7)
}
  0x11   :  { %24 = dma.hbm_to_vmem [thread:$0]  %s1019_s0, 512, %s22_s25, [#allocation4]  }
  0x12   :  { %s791_s17 = scalar_lea.hbm %s1020_s1, 8192 }
  0x13   :  { %p792_p8 = scmp.ne.s32.totalorder %s1020_s1, %s791_s17  ;;  %p795_p9 = scmp.lt.u32.totalorder %s791_s17, %s1020_s1 }
  0x15   :  { %p797_p10 = pnand %p795_p9, %p792_p8 }
  0x17   :  { %800 = shalt.err (!%p797_p10)
}
  0x18   :  { %s801_s22 = scalar_lea.vmem %s864_s27, 8192  ;;  %p806_p12 = scmp.lt.s32.totalorder %s864_s27, %s864_s27 }
  0x19   :  { %p802_p11 = scmp.ne.s32.totalorder %s864_s27, %s801_s22  ;;  %p807_p13 = scmp.lt.s32.totalorder %s801_s22, %s801_s22 }
  0x1b   :  { %p808_p0 = por %p807_p13, %p806_p12 }
  0x1d   :  { %p809_p1 = pnand %p808_p0, %p802_p11 }
  0x1f   :  { %812 = shalt.err (!%p809_p1)
}
  0x20   :  { %s819_s0 = smov 128   ;;  %s820_s23 = smov 8  }
  0x21   :  { %36 = dma.hbm_to_vmem [thread:$0]  %s1020_s1, 8192, %s864_s27, [#allocation6], %s819_s0, %s819_s0, %s820_s23  }
  0x22   :  { %813 = dma.done.wait [#allocation4], 512  }
  0x23   :  { %814 = vsyncadd [#allocation4], 4294966784 }
  0x24   :  { %815 = dma.done.wait [#allocation6], 8192  }
  0x25   :  { %816 = vsyncadd [#allocation6], 4294959104  ;;  %v73_v0 = vld [vmem:[#allocation5 + $0x80] sm:$0xff]  ;;  %v74_v1 = vld [vmem:[#allocation5 + $0x88] sm:$0xff]  ;;  %vm822_vm0 = vmmov 0   ;;  %vm461_vm3 = vcmask 7168  }
  0x26   :  { %v57_v2 = vld [vmem:[#allocation5] sm:$0xff]  ;;  %v646_v3 = vpack.c.bf16 %v74_v1, %v73_v0  ;;  %v58_v4 = vld [vmem:[#allocation5 + $0x8] sm:$0xff]  ;;  %v75_v11 = vld [vmem:[#allocation5 + $0x90] sm:$0xff] }
  0x27   :  { %v105_v5 = vld [vmem:[#allocation5 + $0x180] sm:$0xff]  ;;  %v106_v6 = vld [vmem:[#allocation5 + $0x188] sm:$0xff]  ;;  %v648_v7 = vpack.c.bf16 %v58_v4, %v57_v2  ;;  %v76_v13 = vld [vmem:[#allocation5 + $0x98] sm:$0xff] }
  0x28   :  { %v678_v8 = vpack.c.bf16 %v106_v6, %v105_v5  ;;  %v89_v9 = vld [vmem:[#allocation5 + $0x100] sm:$0xff]  ;;  %v90_v10 = vld [vmem:[#allocation5 + $0x108] sm:$0xff]  ;;  %647 = vmatprep.subr.bf16.mxu0 %v646_v3  ;;  %v59_v14 = vld [vmem:[#allocation5 + $0x10] sm:$0xff]  ;;  %v650_v16 = vpack.c.bf16 %v76_v13, %v75_v11 }
  0x29   :  { %v680_v12 = vpack.c.bf16 %v90_v10, %v89_v9  ;;  %v60_v15 = vld [vmem:[#allocation5 + $0x18] sm:$0xff]  ;;  %649 = vmatpush3.bf16.msra.mxu0 %v648_v7  ;;  %v107_v18 = vld [vmem:[#allocation5 + $0x190] sm:$0xff]  ;;  %v77_v23 = vld [vmem:[#allocation5 + $0xa0] sm:$0xff] }
  0x2a   :  { %679 = vmatprep.subr.bf16.mxu1 %v678_v8  ;;  %v652_v17 = vpack.c.bf16 %v60_v15, %v59_v14  ;;  %v108_v19 = vld [vmem:[#allocation5 + $0x198] sm:$0xff]  ;;  %v91_v20 = vld [vmem:[#allocation5 + $0x110] sm:$0xff]  ;;  %v78_v24 = vld [vmem:[#allocation5 + $0xa8] sm:$0xff]  ;;  %651 = vmatprep.subr.bf16.mxu0 %v650_v16 }
  0x2b   :  { %681 = vmatpush3.bf16.msra.mxu1 %v680_v12  ;;  %v682_v21 = vpack.c.bf16 %v108_v19, %v107_v18  ;;  %v92_v22 = vld [vmem:[#allocation5 + $0x118] sm:$0xff]  ;;  %v654_v26 = vpack.c.bf16 %v78_v24, %v77_v23  ;;  %v61_v27 = vld [vmem:[#allocation5 + $0x20] sm:$0xff]  ;;  %v62_v28 = vld [vmem:[#allocation5 + $0x28] sm:$0xff] }
  0x2c   :  { %v684_v25 = vpack.c.bf16 %v92_v22, %v91_v20  ;;  %v109_v29 = vld [vmem:[#allocation5 + $0x1a0] sm:$0xff]  ;;  %v110_v30 = vld [vmem:[#allocation5 + $0x1a8] sm:$0xff]  ;;  %v656_v33 = vpack.c.bf16 %v62_v28, %v61_v27  ;;  %v79_v35 = vld [vmem:[#allocation5 + $0xb0] sm:$0xff] }
  0x2d   :  { %683 = vmatprep.subr.bf16.mxu1 %v682_v21  ;;  %v93_v31 = vld [vmem:[#allocation5 + $0x120] sm:$0xff]  ;;  %v94_v32 = vld [vmem:[#allocation5 + $0x128] sm:$0xff]  ;;  %653 = vmatpush3.bf16.msra.mxu0 %v652_v17  ;;  %v686_v34 = vpack.c.bf16 %v110_v30, %v109_v29  ;;  %v80_v36 = vld [vmem:[#allocation5 + $0xb8] sm:$0xff] }
  0x2e   :  { %v63_v37 = vld [vmem:[#allocation5 + $0x30] sm:$0xff]  ;;  %655 = vmatprep.subr.bf16.mxu0 %v654_v26  ;;  %v688_v38 = vpack.c.bf16 %v94_v32, %v93_v31  ;;  %v658_v39 = vpack.c.bf16 %v80_v36, %v79_v35  ;;  %v64_v40 = vld [vmem:[#allocation5 + $0x38] sm:$0xff]  ;;  %v81_v46 = vld [vmem:[#allocation5 + $0xc0] sm:$0xff] }
  0x2f   :  { %685 = vmatpush3.bf16.msra.mxu1 %v684_v25  ;;  %v111_v41 = vld [vmem:[#allocation5 + $0x1b0] sm:$0xff]  ;;  %v112_v42 = vld [vmem:[#allocation5 + $0x1b8] sm:$0xff]  ;;  %v82_v47 = vld [vmem:[#allocation5 + $0xc8] sm:$0xff]  ;;  %v660_v48 = vpack.c.bf16 %v64_v40, %v63_v37 }
  0x30   :  { %687 = vmatprep.subr.bf16.mxu1 %v686_v34  ;;  %v690_v43 = vpack.c.bf16 %v112_v42, %v111_v41  ;;  %v95_v44 = vld [vmem:[#allocation5 + $0x130] sm:$0xff]  ;;  %v96_v45 = vld [vmem:[#allocation5 + $0x138] sm:$0xff]  ;;  %v113_v49 = vld [vmem:[#allocation5 + $0x1c0] sm:$0xff]  ;;  %v662_v52 = vpack.c.bf16 %v82_v47, %v81_v46 }
  0x31   :  { %657 = vmatpush3.bf16.msra.mxu0 %v656_v33  ;;  %v114_v50 = vld [vmem:[#allocation5 + $0x1c8] sm:$0xff]  ;;  %v692_v51 = vpack.c.bf16 %v96_v45, %v95_v44  ;;  %v65_v53 = vld [vmem:[#allocation5 + $0x40] sm:$0xff]  ;;  %v83_v58 = vld [vmem:[#allocation5 + $0xd0] sm:$0xff] }
  0x32   :  { %659 = vmatprep.subr.bf16.mxu0 %v658_v39  ;;  %v66_v54 = vld [vmem:[#allocation5 + $0x48] sm:$0xff]  ;;  %v97_v55 = vld [vmem:[#allocation5 + $0x140] sm:$0xff]  ;;  %v694_v56 = vpack.c.bf16 %v114_v50, %v113_v49  ;;  %v84_v59 = vld [vmem:[#allocation5 + $0xd8] sm:$0xff]  ;;  %v821_v39 = vmov 0.0|0.0  }
  0x33   :  { %689 = vmatpush3.bf16.msra.mxu1 %v688_v38  ;;  %v98_v57 = vld [vmem:[#allocation5 + $0x148] sm:$0xff]  ;;  %v115_v60 = vld [vmem:[#allocation5 + $0x1d0] sm:$0xff]  ;;  %v116_v61 = vld [vmem:[#allocation5 + $0x1d8] sm:$0xff]  ;;  %v664_v62 = vpack.c.bf16 %v66_v54, %v65_v53  ;;  %v666_v0 = vpack.c.bf16 %v84_v59, %v83_v58 }
  0x34   :  { %691 = vmatprep.subr.bf16.mxu1 %v690_v43  ;;  %v696_v63 = vpack.c.bf16 %v98_v57, %v97_v55  ;;  %v67_v1 = vld [vmem:[#allocation5 + $0x50] sm:$0xff]  ;;  %v68_v2 = vld [vmem:[#allocation5 + $0x58] sm:$0xff]  ;;  %v698_v4 = vpack.c.bf16 %v116_v61, %v115_v60  ;;  %v85_v6 = vld [vmem:[#allocation5 + $0xe0] sm:$0xff]  ;;  %v823_v61 = vmov 0.0  }
  0x35   :  { %661 = vmatpush3.bf16.msra.mxu0 %v660_v48  ;;  %v99_v3 = vld [vmem:[#allocation5 + $0x150] sm:$0xff]  ;;  %v100_v5 = vld [vmem:[#allocation5 + $0x158] sm:$0xff]  ;;  %v86_v7 = vld [vmem:[#allocation5 + $0xe8] sm:$0xff]  ;;  %v668_v10 = vpack.c.bf16 %v68_v2, %v67_v1 }
  0x36   :  { %663 = vmatprep.subr.bf16.mxu0 %v662_v52  ;;  %v117_v8 = vld [vmem:[#allocation5 + $0x1e0] sm:$0xff]  ;;  %v118_v9 = vld [vmem:[#allocation5 + $0x1e8] sm:$0xff]  ;;  %v700_v13 = vpack.c.bf16 %v100_v5, %v99_v3  ;;  %v670_v14 = vpack.c.bf16 %v86_v7, %v85_v6  ;;  %v87_v19 = vld [vmem:[#allocation5 + $0xf0] sm:$0xff] }
  0x37   :  { %693 = vmatpush3.bf16.msra.mxu1 %v692_v51  ;;  %v69_v11 = vld [vmem:[#allocation5 + $0x60] sm:$0xff]  ;;  %v70_v12 = vld [vmem:[#allocation5 + $0x68] sm:$0xff]  ;;  %v702_v18 = vpack.c.bf16 %v118_v9, %v117_v8  ;;  %v88_v20 = vld [vmem:[#allocation5 + $0xf8] sm:$0xff] }
  0x38   :  { %695 = vmatprep.subr.bf16.mxu1 %v694_v56  ;;  %v101_v15 = vld [vmem:[#allocation5 + $0x160] sm:$0xff]  ;;  %v102_v16 = vld [vmem:[#allocation5 + $0x168] sm:$0xff]  ;;  %v56_v21 = vld [vmem:[#allocation3 + $0x18] sm:$0xff]  ;;  %v672_v24 = vpack.c.bf16 %v70_v12, %v69_v11  ;;  %v674_v26 = vpack.c.bf16 %v88_v20, %v87_v19 }
  0x39   :  { %665 = vmatpush3.bf16.msra.mxu0 %v664_v62  ;;  %v54_v17 = vld [vmem:[#allocation3 + $0x8] sm:$0xff]  ;;  %v119_v22 = vld [vmem:[#allocation5 + $0x1f0] sm:$0xff]  ;;  %v120_v23 = vld [vmem:[#allocation5 + $0x1f8] sm:$0xff]  ;;  %262 = vmatprep.mubr.f32.mxu1 %v56_v21  ;;  %v704_v25 = vpack.c.bf16 %v102_v16, %v101_v15 }
  0x3a   :  { %667 = vmatprep.subr.bf16.mxu0 %v666_v0  ;;  %192 = vmatprep.mubr.f32.mxu0 %v54_v17  ;;  %v71_v27 = vld [vmem:[#allocation5 + $0x70] sm:$0xff]  ;;  %v72_v28 = vld [vmem:[#allocation5 + $0x78] sm:$0xff]  ;;  %v706_v29 = vpack.c.bf16 %v120_v23, %v119_v22  ;;  %v271_v34 = vld [vmem:[%s1022_s3] sm:$0xff] }
  0x3b   :  { %697 = vmatpush3.bf16.msra.mxu1 %v696_v63  ;;  %v103_v30 = vld [vmem:[#allocation5 + $0x170] sm:$0xff]  ;;  %v104_v31 = vld [vmem:[#allocation5 + $0x178] sm:$0xff]  ;;  %v676_v32 = vpack.c.bf16 %v72_v28, %v71_v27  ;;  %v272_v35 = vld [vmem:[%s1022_s3 + $0x8] sm:$0xff] }
  0x3c   :  { %699 = vmatprep.subr.bf16.mxu1 %v698_v4  ;;  %v708_v33 = vpack.c.bf16 %v104_v31, %v103_v30  ;;  %v53_v36 = vld [vmem:[#allocation3] sm:$0xff]  ;;  %v711_v37 = vpack.c.bf16 %v272_v35, %v271_v34  ;;  %v55_v38 = vld [vmem:[#allocation3 + $0x10] sm:$0xff]  ;;  %v274_v41 = vld [vmem:[%s1022_s3 + $0x18] sm:$0xff] }
  0x3d   :  { %669 = vmatpush3.bf16.msra.mxu0 %v668_v10  ;;  %v273_v40 = vld [vmem:[%s1022_s3 + $0x10] sm:$0xff]  ;;  %v275_v43 = vld [vmem:[%s1022_s3 + $0x20] sm:$0xff]  ;;  %v276_v44 = vld [vmem:[%s1022_s3 + $0x28] sm:$0xff] }
  0x3e   :  { %671 = vmatprep.subr.bf16.mxu0 %v670_v14  ;;  %v714_v42 = vpack.c.bf16 %v274_v41, %v273_v40  ;;  %v717_v45 = vpack.c.bf16 %v276_v44, %v275_v43  ;;  %v277_v46 = vld [vmem:[%s1022_s3 + $0x30] sm:$0xff]  ;;  %v278_v47 = vld [vmem:[%s1022_s3 + $0x38] sm:$0xff]  ;;  %v279_v49 = vld [vmem:[%s1022_s3 + $0x40] sm:$0xff] }
  0x3f   :  { %701 = vmatpush3.bf16.msra.mxu1 %v700_v13  ;;  %v720_v48 = vpack.c.bf16 %v278_v47, %v277_v46  ;;  %v280_v50 = vld [vmem:[%s1022_s3 + $0x48] sm:$0xff]  ;;  %v281_v52 = vld [vmem:[%s1022_s3 + $0x50] sm:$0xff]  ;;  %v282_v53 = vld [vmem:[%s1022_s3 + $0x58] sm:$0xff] }
  0x40   :  { %703 = vmatprep.subr.bf16.mxu1 %v702_v18  ;;  %v723_v51 = vpack.c.bf16 %v280_v50, %v279_v49  ;;  %v726_v54 = vpack.c.bf16 %v282_v53, %v281_v52  ;;  %v283_v55 = vld [vmem:[%s1022_s3 + $0x60] sm:$0xff]  ;;  %v284_v56 = vld [vmem:[%s1022_s3 + $0x68] sm:$0xff]  ;;  %v285_v58 = vld [vmem:[%s1022_s3 + $0x70] sm:$0xff] }
  0x41   :  { %673 = vmatpush3.bf16.msra.mxu0 %v672_v24  ;;  %v729_v57 = vpack.c.bf16 %v284_v56, %v283_v55  ;;  %v286_v59 = vld [vmem:[%s1022_s3 + $0x78] sm:$0xff]  ;;  %v367_v62 = vld [vmem:[%s1024_s5] sm:$0xff]  ;;  %v368_v63 = vld [vmem:[%s1024_s5 + $0x8] sm:$0xff] }
  0x42   :  { %675 = vmatprep.subr.bf16.mxu0 %v674_v26  ;;  %v732_v60 = vpack.c.bf16 %v286_v59, %v285_v58  ;;  %v369_v0 = vld [vmem:[%s1024_s5 + $0x10] sm:$0xff]  ;;  %v735_v1 = vpack.c.bf16 %v368_v63, %v367_v62  ;;  %v370_v2 = vld [vmem:[%s1024_s5 + $0x18] sm:$0xff]  ;;  %v371_v4 = vld [vmem:[%s1024_s5 + $0x20] sm:$0xff] }
  0x43   :  { %705 = vmatpush3.bf16.msra.mxu1 %v704_v25  ;;  %v738_v3 = vpack.c.bf16 %v370_v2, %v369_v0  ;;  %v372_v5 = vld [vmem:[%s1024_s5 + $0x28] sm:$0xff]  ;;  %v373_v7 = vld [vmem:[%s1024_s5 + $0x30] sm:$0xff]  ;;  %v374_v8 = vld [vmem:[%s1024_s5 + $0x38] sm:$0xff] }
  0x44   :  { %707 = vmatprep.subr.bf16.mxu1 %v706_v29  ;;  %v741_v6 = vpack.c.bf16 %v372_v5, %v371_v4  ;;  %v744_v9 = vpack.c.bf16 %v374_v8, %v373_v7  ;;  %v375_v10 = vld [vmem:[%s1024_s5 + $0x40] sm:$0xff]  ;;  %v376_v11 = vld [vmem:[%s1024_s5 + $0x48] sm:$0xff]  ;;  %v377_v13 = vld [vmem:[%s1024_s5 + $0x50] sm:$0xff] }
  0x45   :  { %677 = vmatpush3.bf16.msra.mxu0 %v676_v32  ;;  %v747_v12 = vpack.c.bf16 %v376_v11, %v375_v10  ;;  %v378_v14 = vld [vmem:[%s1024_s5 + $0x58] sm:$0xff]  ;;  %v379_v16 = vld [vmem:[%s1024_s5 + $0x60] sm:$0xff]  ;;  %v380_v17 = vld [vmem:[%s1024_s5 + $0x68] sm:$0xff] }
  0x46   :  { %710 = vmatprep.subr.bf16.mxu0 %v821_v39  ;;  %v750_v15 = vpack.c.bf16 %v378_v14, %v377_v13  ;;  %v753_v18 = vpack.c.bf16 %v380_v17, %v379_v16  ;;  %v469_v20 = vld [vmem:[%s1021_s2] ss:$0 sm:$0xff]  ;;  %v381_v30 = vld [vmem:[%s1024_s5 + $0x70] sm:$0xff]  ;;  %v382_v31 = vld [vmem:[%s1024_s5 + $0x78] sm:$0xff] }
  0x47   :  { %709 = vmatpush3.bf16.msra.mxu1 %v708_v33  ;;  %v756_v32 = vpack.c.bf16 %v382_v31, %v381_v30  ;;  %v470_v33 = vld [vmem:[%s1023_s4] ss:$0 sm:$0xff] }
  0x48   :  { %734 = vmatprep.subr.bf16.mxu1 %v821_v39  ;;  %193 = vmatmul.mubr.f32.vlgmr.msra.gmra.mrb[0].mxu0 %v53_v36 }
  0x49   :  { %712 = vmatpush3.bf16.msra.mxu0 %v711_v37  ;;  %608 = vmatprep.mubr.msk.f32.mxu0 %vm822_vm0, %v823_v61 }
  0x4a   :  { %263 = vmatmul.mubr.f32.vlgmr.msra.gmra.mrb[0].mxu1 %v55_v38  ;;  %713 = vmatprep.subr.bf16.mxu0 %v821_v39 }
  0x4b   :  { %643 = vmatprep.mubr.msk.f32.mxu1 %vm822_vm0, %v823_v61  ;;  %736 = vmatpush3.bf16.msra.mxu1 %v735_v1 }
  0x4c   :  { %737 = vmatprep.subr.bf16.mxu1 %v821_v39 }
  0x4d   :  { %715 = vmatpush3.bf16.msra.mxu0 %v714_v42 }
  0x4e   :  { %716 = vmatprep.subr.bf16.mxu0 %v821_v39 }
  0x4f   :  { %739 = vmatpush3.bf16.msra.mxu1 %v738_v3 }
  0x50   :  { %740 = vmatprep.subr.bf16.mxu1 %v821_v39 }
  0x51   :  { %718 = vmatpush3.bf16.msra.mxu0 %v717_v45 }
  0x52   :  { %719 = vmatprep.subr.bf16.mxu0 %v821_v39 }
  0x53   :  { %742 = vmatpush3.bf16.msra.mxu1 %v741_v6 }
  0x54   :  { %743 = vmatprep.subr.bf16.mxu1 %v821_v39 }
  0x55   :  { %721 = vmatpush3.bf16.msra.mxu0 %v720_v48 }
  0x56   :  { %722 = vmatprep.subr.bf16.mxu0 %v821_v39 }
  0x57   :  { %745 = vmatpush3.bf16.msra.mxu1 %v744_v9 }
  0x58   :  { %746 = vmatprep.subr.bf16.mxu1 %v821_v39 }
  0x59   :  { %724 = vmatpush3.bf16.msra.mxu0 %v723_v51 }
  0x5a   :  { %725 = vmatprep.subr.bf16.mxu0 %v821_v39 }
  0x5b   :  { %748 = vmatpush3.bf16.msra.mxu1 %v747_v12 }
  0x5c   :  { %749 = vmatprep.subr.bf16.mxu1 %v821_v39 }
  0x5d   :  { %727 = vmatpush3.bf16.msra.mxu0 %v726_v54 }
  0x5e   :  { %728 = vmatprep.subr.bf16.mxu0 %v821_v39 }
  0x5f   :  { %751 = vmatpush3.bf16.msra.mxu1 %v750_v15 }
  0x60   :  { %752 = vmatprep.subr.bf16.mxu1 %v821_v39 }
  0x61   :  { %730 = vmatpush3.bf16.msra.mxu0 %v729_v57 }
  0x62   :  { %731 = vmatprep.subr.bf16.mxu0 %v821_v39 }
  0x63   :  { %754 = vmatpush3.bf16.msra.mxu1 %v753_v18 }
  0x64   :  { %755 = vmatprep.subr.bf16.mxu1 %v821_v39  ;;  %v384_v39 = vstv %s1025_s6 }
  0x65   :  { %733 = vmatpush3.bf16.msra.mxu0 %v732_v60 }
  0x67   :  { %757 = vmatpush3.bf16.msra.mxu1 %v756_v32 }
 0x11b   :  { %v504_v19 = vpop.f32.mrb[0].mxu0 }
 0x11c   :  { %v505_v21 = vpop.f32.mrb[1].mxu0 }
 0x11d   :  { %v539_v22 = vpop.f32.mrb[0].mxu1  ;;  %v506_v23 = vadd.f32 %v505_v21, %v504_v19 }
 0x11e   :  { %v540_v24 = vpop.f32.mrb[1].mxu1 }
 0x11f   :  { %v541_v25 = vadd.f32 %v540_v24, %v539_v22  ;;  %v195_v26 = vadd.f32 %v506_v23, %v469_v20 }
 0x121   :  { %v265_v27 = vadd.f32 %v541_v25, %v195_v26 }
 0x123   :  { %v269_v28 = vmul.f32 0.2, %v265_v27  ;;  %vm268_vm1 = vcmp.gt.f32.partialorder %v265_v27, 0.0 }
 0x125   :  { %v270_v29 = vsel %vm268_vm1, %v265_v27, %v269_v28 }
 0x126   :  { %609 = vmatmul.mubr.f32.vlgmr.msra.gmra.mrb[2].mxu0 %v270_v29 }
 0x1f9   :  { %v360_v34 = vpop.f32.mrb[2].mxu0 }
 0x1fa   :  { %v361_v35 = vadd.f32 %v470_v33, %v360_v34  ;;  %v610_v36 = vpop.f32.mrb[3].mxu0 }
 0x1fc   :  { %vm364_vm2 = vcmp.gt.f32.partialorder %v361_v35, 0.0  ;;  %v365_v37 = vmul.f32 0.2, %v361_v35 }
 0x1fe   :  { %v366_v38 = vsel %vm364_vm2, %v361_v35, %v365_v37 }
 0x1ff   :  { %644 = vmatmul.mubr.f32.vlgmr.msra.gmra.mrb[2].mxu1 %v366_v38 }
 0x2d2   :  { %v451_v40 = vpop.f32.mrb[2].mxu1 }
 0x2d3   :  { %v452_v41 = vadd.f32 %v451_v40, %v384_v39  ;;  %v645_v42 = vpop.f32.mrb[3].mxu1 }
 0x2d5   :  { %v471_v43 = vmul.f32 -1.442695, %v452_v41 }
 0x2d7   :  { %765 = vpow2.f32 %v471_v43 }
 0x2e1   :  { %v766_v44 = vpop.eup %765 }
 0x2e2   :  { %v458_v45 = vadd.f32 1.0, %v766_v44 }
 0x2e4   :  { %767 = vrcp.f32 %v458_v45 }
 0x2ee   :  { %v768_v46 = vpop.eup %767 }
 0x2ef   :  { %462 = vst.msk [vmem:[%s1026_s7] sm:$0xff] %vm461_vm3, %v768_v46 }
 0x2f0   :  { %467 = vsyncpa [#allocation4], 1 }
 0x2f1   :  { %468 = vsyncpa [#allocation6], 1 }

</bundles_post_ra>
